<compile_context>
chip_gen: v6e
topology: v6e:2x2x1
jax: 0.10.0
libtpu: 0.0.40
codegen_flags: <defaults>
</compile_context>

<pallas_src>
import jax
import jax.numpy as jnp
from jax.experimental import pallas as pl
from jax.experimental.pallas import tpu as pltpu


LANE = 128


# ---------------------------------------------------------------------------
# Kernel
# ---------------------------------------------------------------------------
def fnn_kernel(x_ref, w1_ref, b1_ref, w2_ref, b2_ref,
               w3_ref, b3_ref, w4_ref, b4_ref, out_ref):
    # x arrives f32; cast to bf16 in-register right before the MXU, accumulate f32.
    h = jnp.dot(x_ref[...].astype(jnp.bfloat16), w1_ref[...],
                preferred_element_type=jnp.float32)
    h = jnp.maximum(h + b1_ref[...], 0.0)
    # Layer 2 + ReLU
    h = jnp.dot(h.astype(jnp.bfloat16), w2_ref[...],
                preferred_element_type=jnp.float32)
    h = jnp.maximum(h + b2_ref[...], 0.0)
    # Layer 3 + ReLU
    h = jnp.dot(h.astype(jnp.bfloat16), w3_ref[...],
                preferred_element_type=jnp.float32)
    h = jnp.maximum(h + b3_ref[...], 0.0)
    # Layer 4 (no activation)
    h = jnp.dot(h.astype(jnp.bfloat16), w4_ref[...],
                preferred_element_type=jnp.float32)
    out_ref[...] = (h + b4_ref[...]).astype(out_ref.dtype)


# ---------------------------------------------------------------------------
# Helpers
# ---------------------------------------------------------------------------
def _round_up(n, m):
    return ((n + m - 1) // m) * m


def _cdiv(a, b):
    return (a + b - 1) // b


def _pad2d(a, rows, cols):
    r, c = a.shape
    if r == rows and c == cols:
        return a
    return jnp.pad(a, ((0, rows - r), (0, cols - c)))


def _vmem_capacity_bytes():
    try:
        return int(pltpu.get_tpu_info().vmem_capacity_bytes)
    except Exception:
        return 64 << 20  # conservative default = v7x per-TC VMEM


def _vmem_limit_bytes(TB, d_in, d1_p, d2_p, d3_p, d_out, weight_bufs):
    x_bytes = 2 * TB * d_in * 4                       # double-buffered f32 x tile
    out_bytes = 2 * TB * d_out * 4                    # double-buffered f32 out tile
    w_elems = d_in * d1_p + d1_p * d2_p + d2_p * d3_p + d3_p * d_out
    b_elems = d1_p + d2_p + d3_p + d_out
    wb_bytes = weight_bufs * (2 * w_elems + 4 * b_elems)
    inter_bytes = 2 * TB * max(d1_p, d2_p, d3_p, d_out) * (4 + 2)  # f32 + bf16 hidden
    estimate = x_bytes + out_bytes + wb_bytes + inter_bytes + (4 << 20)
    cap = int(0.85 * _vmem_capacity_bytes())          # ~54 MiB v7x, ~108 MiB v5e/v6e
    return int(min(max(estimate, 16 << 20), cap))


def _choose_batch_tile(B, batch_tile):
    """Balanced batch tiles (multiples of 16) instead of rounding B up to a fixed
    tile; keep >=2 grid steps for B >= 32 so v7x's two TensorCores both work."""
    if B <= 16:
        return 16, 1
    n_tiles = _cdiv(B, batch_tile)
    if B >= 32:
        n_tiles = max(n_tiles, 2)
    TB = _round_up(_cdiv(B, n_tiles), 16)
    n_tiles = _cdiv(B, TB)
    return TB, n_tiles


# ---------------------------------------------------------------------------
# One-time parameter preparation (pad hidden dims, cast weights to bf16)
# ---------------------------------------------------------------------------
def prepare_fnn_params(params, lane=LANE):
    """Pad/cast ONCE and reuse across every forward call.

    Hidden dims are zero-padded to multiples of 128 (exact: zero cols -> ReLU(0)=0,
    zero rows contribute 0). The input and output dims stay at their true sizes —
    a BlockSpec block spanning the full array dim is always legal, and keeping the
    tiny output unpadded avoids a padded f32 writeback slab.
    """
    d_in, d1 = params["w1"].shape
    d2 = params["w2"].shape[1]
    d3 = params["w3"].shape[1]
    d_out = params["w4"].shape[1]
    d1_p, d2_p, d3_p = (_round_up(d, lane) for d in (d1, d2, d3))
    prepared = {
        "w1": _pad2d(params["w1"], d_in, d1_p).astype(jnp.bfloat16),
        "b1": _pad2d(params["b1"].reshape(1, -1), 1, d1_p).astype(jnp.float32),
        "w2": _pad2d(params["w2"], d1_p, d2_p).astype(jnp.bfloat16),
        "b2": _pad2d(params["b2"].reshape(1, -1), 1, d2_p).astype(jnp.float32),
        "w3": _pad2d(params["w3"], d2_p, d3_p).astype(jnp.bfloat16),
        "b3": _pad2d(params["b3"].reshape(1, -1), 1, d3_p).astype(jnp.float32),
        "w4": _pad2d(params["w4"], d3_p, d_out).astype(jnp.bfloat16),
        "b4": params["b4"].reshape(1, -1).astype(jnp.float32),
        "_dims": (d_in, d1, d2, d3, d_out),
    }
    return prepared


# ---------------------------------------------------------------------------
# pallas_call builder + forward
# ---------------------------------------------------------------------------
def _build_fnn_call(TB, grid_n, d_in, d1_p, d2_p, d3_p, d_out, B_p,
                    single_buffer_weights, vmem_limit):
    # Weights/biases have constant block indices -> VMEM-resident across the grid;
    # request a single pipeline buffer for them when supported.
    w_kw = dict(pipeline_mode=pl.Buffered(1)) if single_buffer_weights else {}

    in_specs = [
        pl.BlockSpec((TB, d_in), lambda i: (i, 0)),              # x: tiled over batch
        pl.BlockSpec((d_in, d1_p), lambda i: (0, 0), **w_kw),    # w1
        pl.BlockSpec((1, d1_p), lambda i: (0, 0), **w_kw),       # b1
        pl.BlockSpec((d1_p, d2_p), lambda i: (0, 0), **w_kw),    # w2
        pl.BlockSpec((1, d2_p), lambda i: (0, 0), **w_kw),       # b2
        pl.BlockSpec((d2_p, d3_p), lambda i: (0, 0), **w_kw),    # w3
        pl.BlockSpec((1, d3_p), lambda i: (0, 0), **w_kw),       # b3
        pl.BlockSpec((d3_p, d_out), lambda i: (0, 0), **w_kw),   # w4
        pl.BlockSpec((1, d_out), lambda i: (0, 0), **w_kw),      # b4
    ]
    out_specs = pl.BlockSpec((TB, d_out), lambda i: (i, 0))

    return pl.pallas_call(
        fnn_kernel,
        out_shape=jax.ShapeDtypeStruct((B_p, d_out), jnp.float32),
        grid_spec=pltpu.PrefetchScalarGridSpec(
            num_scalar_prefetch=0,
            grid=(grid_n,),
            in_specs=in_specs,
            out_specs=out_specs,
        ),
        compiler_params=pltpu.CompilerParams(
            dimension_semantics=("parallel",),
            vmem_limit_bytes=vmem_limit,
        ),
    )


def fnn_forward(x, prepared, *, batch_tile=512):
    """x: (B, input_size) f32. prepared: output of prepare_fnn_params()."""
    d_in, d1, d2, d3, d_out = prepared["_dims"]
    B, x_din = x.shape
    assert x_din == d_in, f"expected input_size={d_in}, got {x_din}"

    d1_p = prepared["w1"].shape[1]
    d2_p = prepared["w2"].shape[1]
    d3_p = prepared["w3"].shape[1]

    TB, grid_n = _choose_batch_tile(B, batch_tile)
    B_p = TB * grid_n

    # Only touch x in the wrapper when the batch needs padding; otherwise the
    # kernel streams the caller's f32 array directly (no extra HBM pass).
    x_in = x if B_p == B else jnp.pad(x, ((0, B_p - B), (0, 0)))

    operands = (x_in,
                prepared["w1"], prepared["b1"],
                prepared["w2"], prepared["b2"],
                prepared["w3"], prepared["b3"],
                prepared["w4"], prepared["b4"])

    def run(single_buffer_weights):
        vmem_limit = _vmem_limit_bytes(
            TB, d_in, d1_p, d2_p, d3_p, d_out,
            weight_bufs=1 if single_buffer_weights else 2)
        call = _build_fnn_call(TB, grid_n, d_in, d1_p, d2_p, d3_p, d_out, B_p,
                               single_buffer_weights, vmem_limit)
        return call(*operands)

    try:
        y = run(single_buffer_weights=True)
    except Exception:
        # pipeline_mode / Buffered(1) unsupported in this jax: default buffering.
        y = run(single_buffer_weights=False)

    return y if B_p == B else y[:B]


# ---------------------------------------------------------------------------
# Param init (mimics nn.Linear's U(-1/sqrt(fan_in), 1/sqrt(fan_in)))
# ---------------------------------------------------------------------------
def init_params(key, input_size, h1, h2, h3, output_size):
    dims = [(input_size, h1), (h1, h2), (h2, h3), (h3, output_size)]
    params = {}
    keys = jax.random.split(key, 2 * len(dims))
    for i, (fan_in, fan_out) in enumerate(dims):
        bound = 1.0 / jnp.sqrt(float(fan_in))
        params[f"w{i + 1}"] = jax.random.uniform(
            keys[2 * i], (fan_in, fan_out), jnp.float32, -bound, bound)
        params[f"b{i + 1}"] = jax.random.uniform(
            keys[2 * i + 1], (1, fan_out), jnp.float32, -bound, bound)
    return params


if __name__ == "__main__":
    # Small shapes consistent with the module's forward.
    batch = 8
    input_size, h1, h2, h3, output_size = 16, 32, 32, 32, 4

    key = jax.random.PRNGKey(0)
    k_x, k_p = jax.random.split(key)
    x = jax.random.normal(k_x, (batch, input_size), dtype=jnp.float32)
    params = init_params(k_p, input_size, h1, h2, h3, output_size)

    prepared = prepare_fnn_params(params)   # pad/cast ONCE, reuse every call
    y = fnn_forward(x, prepared)
    jax.block_until_ready(y)

    # Reference with the same numerics (bf16 matmul inputs, f32 accumulation).
    def ref_bf16(x, p):
        def lin(h, w, b):
            return jnp.dot(h.astype(jnp.bfloat16), w.astype(jnp.bfloat16),
                           preferred_element_type=jnp.float32) + b
        h = jnp.maximum(lin(x, p["w1"], p["b1"]), 0.0)
        h = jnp.maximum(lin(h, p["w2"], p["b2"]), 0.0)
        h = jnp.maximum(lin(h, p["w3"], p["b3"]), 0.0)
        return lin(h, p["w4"], p["b4"])

    # Full-f32 reference (the PyTorch-equivalent math) for a coarser sanity check.
    def ref_f32(x, p):
        h = jnp.maximum(x @ p["w1"] + p["b1"], 0.0)
        h = jnp.maximum(h @ p["w2"] + p["b2"], 0.0)
        h = jnp.maximum(h @ p["w3"] + p["b3"], 0.0)
        return h @ p["w4"] + p["b4"]

    assert y.shape == (batch, output_size)
    assert jnp.allclose(y, ref_bf16(x, params), atol=1e-3, rtol=1e-3)
    assert jnp.allclose(y, ref_f32(x, params), atol=5e-2, rtol=5e-2)

    print("KERNEL_OK")
</pallas_src>

<mosaic_0001>
module attributes {stable_mosaic.version = 11 : i64} {
  func.func @fnn_kernel(%arg0: i32, %arg1: memref<16x16xf32, #tpu.memory_space<vmem>>, %arg2: memref<16x128xbf16, #tpu.memory_space<vmem>>, %arg3: memref<1x128xf32, #tpu.memory_space<vmem>>, %arg4: memref<128x128xbf16, #tpu.memory_space<vmem>>, %arg5: memref<1x128xf32, #tpu.memory_space<vmem>>, %arg6: memref<128x128xbf16, #tpu.memory_space<vmem>>, %arg7: memref<1x128xf32, #tpu.memory_space<vmem>>, %arg8: memref<128x4xbf16, #tpu.memory_space<vmem>>, %arg9: memref<1x4xf32, #tpu.memory_space<vmem>>, %arg10: memref<16x4xf32, #tpu.memory_space<vmem>>) attributes {dimension_semantics = [#tpu.dimension_semantics<parallel>], iteration_bounds = array<i64: 1>, scalar_prefetch = 0 : i64, scratch_operands = 0 : i64, tpu.core_type = #tpu.core_type<tc>, window_params = [{transform_indices = @transform_0, window_bounds = array<i64: 16, 16>}, {pipeline_mode = #tpu.pipeline_mode<synchronous>, transform_indices = @transform_1, window_bounds = array<i64: 16, 128>}, {pipeline_mode = #tpu.pipeline_mode<synchronous>, transform_indices = @transform_2, window_bounds = array<i64: 1, 128>}, {pipeline_mode = #tpu.pipeline_mode<synchronous>, transform_indices = @transform_3, window_bounds = array<i64: 128, 128>}, {pipeline_mode = #tpu.pipeline_mode<synchronous>, transform_indices = @transform_4, window_bounds = array<i64: 1, 128>}, {pipeline_mode = #tpu.pipeline_mode<synchronous>, transform_indices = @transform_5, window_bounds = array<i64: 128, 128>}, {pipeline_mode = #tpu.pipeline_mode<synchronous>, transform_indices = @transform_6, window_bounds = array<i64: 1, 128>}, {pipeline_mode = #tpu.pipeline_mode<synchronous>, transform_indices = @transform_7, window_bounds = array<i64: 128, 4>}, {pipeline_mode = #tpu.pipeline_mode<synchronous>, transform_indices = @transform_8, window_bounds = array<i64: 1, 4>}, {transform_indices = @transform_9, window_bounds = array<i64: 16, 4>}]} {
    %c0 = arith.constant 0 : index
    %c0_0 = arith.constant 0 : index
    %0 = vector.load %arg1[%c0, %c0_0] : memref<16x16xf32, #tpu.memory_space<vmem>>, vector<16x16xf32>
    %1 = arith.truncf %0 : vector<16x16xf32> to vector<16x16xbf16>
    %c0_1 = arith.constant 0 : index
    %c0_2 = arith.constant 0 : index
    %2 = vector.load %arg2[%c0_1, %c0_2] : memref<16x128xbf16, #tpu.memory_space<vmem>>, vector<16x128xbf16>
    %cst = arith.constant dense<0.000000e+00> : vector<16x128xf32>
    %3 = tpu.matmul %1, %2, %cst {dimension_numbers = #tpu.dot_dimension_numbers<[1], [0], [0], [1], [0, 0, 1, 1], [], []>} : vector<16x16xbf16>, vector<16x128xbf16>, vector<16x128xf32> -> vector<16x128xf32>
    %c0_3 = arith.constant 0 : index
    %c0_4 = arith.constant 0 : index
    %4 = vector.load %arg3[%c0_3, %c0_4] : memref<1x128xf32, #tpu.memory_space<vmem>>, vector<1x128xf32>
    %5 = vector.broadcast %4 : vector<1x128xf32> to vector<16x128xf32>
    %6 = arith.addf %3, %5 : vector<16x128xf32>
    %cst_5 = arith.constant 0.000000e+00 : f32
    %7 = vector.broadcast %cst_5 : f32 to vector<16x128xf32>
    %8 = arith.maximumf %6, %7 : vector<16x128xf32>
    %9 = arith.truncf %8 : vector<16x128xf32> to vector<16x128xbf16>
    %c0_6 = arith.constant 0 : index
    %c0_7 = arith.constant 0 : index
    %10 = vector.load %arg4[%c0_6, %c0_7] : memref<128x128xbf16, #tpu.memory_space<vmem>>, vector<128x128xbf16>
    %cst_8 = arith.constant dense<0.000000e+00> : vector<16x128xf32>
    %11 = tpu.matmul %9, %10, %cst_8 {dimension_numbers = #tpu.dot_dimension_numbers<[1], [0], [0], [1], [0, 0, 1, 1], [], []>} : vector<16x128xbf16>, vector<128x128xbf16>, vector<16x128xf32> -> vector<16x128xf32>
    %c0_9 = arith.constant 0 : index
    %c0_10 = arith.constant 0 : index
    %12 = vector.load %arg5[%c0_9, %c0_10] : memref<1x128xf32, #tpu.memory_space<vmem>>, vector<1x128xf32>
    %13 = vector.broadcast %12 : vector<1x128xf32> to vector<16x128xf32>
    %14 = arith.addf %11, %13 : vector<16x128xf32>
    %cst_11 = arith.constant 0.000000e+00 : f32
    %15 = vector.broadcast %cst_11 : f32 to vector<16x128xf32>
    %16 = arith.maximumf %14, %15 : vector<16x128xf32>
    %17 = arith.truncf %16 : vector<16x128xf32> to vector<16x128xbf16>
    %c0_12 = arith.constant 0 : index
    %c0_13 = arith.constant 0 : index
    %18 = vector.load %arg6[%c0_12, %c0_13] : memref<128x128xbf16, #tpu.memory_space<vmem>>, vector<128x128xbf16>
    %cst_14 = arith.constant dense<0.000000e+00> : vector<16x128xf32>
    %19 = tpu.matmul %17, %18, %cst_14 {dimension_numbers = #tpu.dot_dimension_numbers<[1], [0], [0], [1], [0, 0, 1, 1], [], []>} : vector<16x128xbf16>, vector<128x128xbf16>, vector<16x128xf32> -> vector<16x128xf32>
    %c0_15 = arith.constant 0 : index
    %c0_16 = arith.constant 0 : index
    %20 = vector.load %arg7[%c0_15, %c0_16] : memref<1x128xf32, #tpu.memory_space<vmem>>, vector<1x128xf32>
    %21 = vector.broadcast %20 : vector<1x128xf32> to vector<16x128xf32>
    %22 = arith.addf %19, %21 : vector<16x128xf32>
    %cst_17 = arith.constant 0.000000e+00 : f32
    %23 = vector.broadcast %cst_17 : f32 to vector<16x128xf32>
    %24 = arith.maximumf %22, %23 : vector<16x128xf32>
    %25 = arith.truncf %24 : vector<16x128xf32> to vector<16x128xbf16>
    %c0_18 = arith.constant 0 : index
    %c0_19 = arith.constant 0 : index
    %26 = vector.load %arg8[%c0_18, %c0_19] : memref<128x4xbf16, #tpu.memory_space<vmem>>, vector<128x4xbf16>
    %cst_20 = arith.constant dense<0.000000e+00> : vector<16x4xf32>
    %27 = tpu.matmul %25, %26, %cst_20 {dimension_numbers = #tpu.dot_dimension_numbers<[1], [0], [0], [1], [0, 0, 1, 1], [], []>} : vector<16x128xbf16>, vector<128x4xbf16>, vector<16x4xf32> -> vector<16x4xf32>
    %c0_21 = arith.constant 0 : index
    %c0_22 = arith.constant 0 : index
    %28 = vector.load %arg9[%c0_21, %c0_22] : memref<1x4xf32, #tpu.memory_space<vmem>>, vector<1x4xf32>
    %29 = vector.broadcast %28 : vector<1x4xf32> to vector<16x4xf32>
    %30 = arith.addf %27, %29 : vector<16x4xf32>
    %c0_23 = arith.constant 0 : index
    %c0_24 = arith.constant 0 : index
    %31 = vector.load %arg10[%c0_23, %c0_24] : memref<16x4xf32, #tpu.memory_space<vmem>>, vector<16x4xf32>
    tpu.vector_store %arg10[%c0_23, %c0_24], %30 {strides = array<i32>} : memref<16x4xf32, #tpu.memory_space<vmem>>, vector<16x4xf32>,
    return
  }
  func.func @transform_0(%arg0: i32) -> (i32, i32) {
    %c0_i32 = arith.constant 0 : i32
    %c0_i32_0 = arith.constant 0 : i32
    return %arg0, %c0_i32 : i32, i32
  }
  func.func @transform_1(%arg0: i32) -> (i32, i32) {
    %c0_i32 = arith.constant 0 : i32
    %c0_i32_0 = arith.constant 0 : i32
    %c0_i32_1 = arith.constant 0 : i32
    return %c0_i32, %c0_i32_0 : i32, i32
  }
  func.func @transform_2(%arg0: i32) -> (i32, i32) {
    %c0_i32 = arith.constant 0 : i32
    %c0_i32_0 = arith.constant 0 : i32
    %c0_i32_1 = arith.constant 0 : i32
    return %c0_i32, %c0_i32_0 : i32, i32
  }
  func.func @transform_3(%arg0: i32) -> (i32, i32) {
    %c0_i32 = arith.constant 0 : i32
    %c0_i32_0 = arith.constant 0 : i32
    %c0_i32_1 = arith.constant 0 : i32
    return %c0_i32, %c0_i32_0 : i32, i32
  }
  func.func @transform_4(%arg0: i32) -> (i32, i32) {
    %c0_i32 = arith.constant 0 : i32
    %c0_i32_0 = arith.constant 0 : i32
    %c0_i32_1 = arith.constant 0 : i32
    return %c0_i32, %c0_i32_0 : i32, i32
  }
  func.func @transform_5(%arg0: i32) -> (i32, i32) {
    %c0_i32 = arith.constant 0 : i32
    %c0_i32_0 = arith.constant 0 : i32
    %c0_i32_1 = arith.constant 0 : i32
    return %c0_i32, %c0_i32_0 : i32, i32
  }
  func.func @transform_6(%arg0: i32) -> (i32, i32) {
    %c0_i32 = arith.constant 0 : i32
    %c0_i32_0 = arith.constant 0 : i32
    %c0_i32_1 = arith.constant 0 : i32
    return %c0_i32, %c0_i32_0 : i32, i32
  }
  func.func @transform_7(%arg0: i32) -> (i32, i32) {
    %c0_i32 = arith.constant 0 : i32
    %c0_i32_0 = arith.constant 0 : i32
    %c0_i32_1 = arith.constant 0 : i32
    return %c0_i32, %c0_i32_0 : i32, i32
  }
  func.func @transform_8(%arg0: i32) -> (i32, i32) {
    %c0_i32 = arith.constant 0 : i32
    %c0_i32_0 = arith.constant 0 : i32
    %c0_i32_1 = arith.constant 0 : i32
    return %c0_i32, %c0_i32_0 : i32, i32
  }
  func.func @transform_9(%arg0: i32) -> (i32, i32) {
    %c0_i32 = arith.constant 0 : i32
    %c0_i32_0 = arith.constant 0 : i32
    return %arg0, %c0_i32 : i32, i32
  }
}

module attributes {stable_mosaic.version = 11 : i64} {
  func.func @fnn_kernel(%arg0: i32, %arg1: memref<16x16xf32, #tpu.memory_space<vmem>>, %arg2: memref<16x128xbf16, #tpu.memory_space<vmem>>, %arg3: memref<1x128xf32, #tpu.memory_space<vmem>>, %arg4: memref<128x128xbf16, #tpu.memory_space<vmem>>, %arg5: memref<1x128xf32, #tpu.memory_space<vmem>>, %arg6: memref<128x128xbf16, #tpu.memory_space<vmem>>, %arg7: memref<1x128xf32, #tpu.memory_space<vmem>>, %arg8: memref<128x4xbf16, #tpu.memory_space<vmem>>, %arg9: memref<1x4xf32, #tpu.memory_space<vmem>>, %arg10: memref<16x4xf32, #tpu.memory_space<vmem>>) attributes {dimension_semantics = [#tpu.dimension_semantics<parallel>], iteration_bounds = array<i64: 1>, scalar_prefetch = 0 : i64, scratch_operands = 0 : i64, tpu.core_type = #tpu.core_type<tc>, window_params = [{transform_indices = @transform_0, window_bounds = array<i64: 16, 16>}, {pipeline_mode = #tpu.pipeline_mode<synchronous>, transform_indices = @transform_1, window_bounds = array<i64: 16, 128>}, {pipeline_mode = #tpu.pipeline_mode<synchronous>, transform_indices = @transform_2, window_bounds = array<i64: 1, 128>}, {pipeline_mode = #tpu.pipeline_mode<synchronous>, transform_indices = @transform_3, window_bounds = array<i64: 128, 128>}, {pipeline_mode = #tpu.pipeline_mode<synchronous>, transform_indices = @transform_4, window_bounds = array<i64: 1, 128>}, {pipeline_mode = #tpu.pipeline_mode<synchronous>, transform_indices = @transform_5, window_bounds = array<i64: 128, 128>}, {pipeline_mode = #tpu.pipeline_mode<synchronous>, transform_indices = @transform_6, window_bounds = array<i64: 1, 128>}, {pipeline_mode = #tpu.pipeline_mode<synchronous>, transform_indices = @transform_7, window_bounds = array<i64: 128, 4>}, {pipeline_mode = #tpu.pipeline_mode<synchronous>, transform_indices = @transform_8, window_bounds = array<i64: 1, 4>}, {transform_indices = @transform_9, window_bounds = array<i64: 16, 4>}]} {
    %c0 = arith.constant 0 : index
    %c0_0 = arith.constant 0 : index
    %0 = vector.load %arg1[%c0, %c0_0] : memref<16x16xf32, #tpu.memory_space<vmem>>, vector<16x16xf32>
    %1 = arith.truncf %0 : vector<16x16xf32> to vector<16x16xbf16>
    %c0_1 = arith.constant 0 : index
    %c0_2 = arith.constant 0 : index
    %2 = vector.load %arg2[%c0_1, %c0_2] : memref<16x128xbf16, #tpu.memory_space<vmem>>, vector<16x128xbf16>
    %cst = arith.constant dense<0.000000e+00> : vector<16x128xf32>
    %3 = tpu.matmul %1, %2, %cst {dimension_numbers = #tpu.dot_dimension_numbers<[1], [0], [0], [1], [0, 0, 1, 1], [], []>} : vector<16x16xbf16>, vector<16x128xbf16>, vector<16x128xf32> -> vector<16x128xf32>
    %c0_3 = arith.constant 0 : index
    %c0_4 = arith.constant 0 : index
    %4 = vector.load %arg3[%c0_3, %c0_4] : memref<1x128xf32, #tpu.memory_space<vmem>>, vector<1x128xf32>
    %5 = vector.broadcast %4 : vector<1x128xf32> to vector<16x128xf32>
    %6 = arith.addf %3, %5 : vector<16x128xf32>
    %cst_5 = arith.constant 0.000000e+00 : f32
    %7 = vector.broadcast %cst_5 : f32 to vector<16x128xf32>
    %8 = arith.maximumf %6, %7 : vector<16x128xf32>
    %9 = arith.truncf %8 : vector<16x128xf32> to vector<16x128xbf16>
    %c0_6 = arith.constant 0 : index
    %c0_7 = arith.constant 0 : index
    %10 = vector.load %arg4[%c0_6, %c0_7] : memref<128x128xbf16, #tpu.memory_space<vmem>>, vector<128x128xbf16>
    %cst_8 = arith.constant dense<0.000000e+00> : vector<16x128xf32>
    %11 = tpu.matmul %9, %10, %cst_8 {dimension_numbers = #tpu.dot_dimension_numbers<[1], [0], [0], [1], [0, 0, 1, 1], [], []>} : vector<16x128xbf16>, vector<128x128xbf16>, vector<16x128xf32> -> vector<16x128xf32>
    %c0_9 = arith.constant 0 : index
    %c0_10 = arith.constant 0 : index
    %12 = vector.load %arg5[%c0_9, %c0_10] : memref<1x128xf32, #tpu.memory_space<vmem>>, vector<1x128xf32>
    %13 = vector.broadcast %12 : vector<1x128xf32> to vector<16x128xf32>
    %14 = arith.addf %11, %13 : vector<16x128xf32>
    %cst_11 = arith.constant 0.000000e+00 : f32
    %15 = vector.broadcast %cst_11 : f32 to vector<16x128xf32>
    %16 = arith.maximumf %14, %15 : vector<16x128xf32>
    %17 = arith.truncf %16 : vector<16x128xf32> to vector<16x128xbf16>
    %c0_12 = arith.constant 0 : index
    %c0_13 = arith.constant 0 : index
    %18 = vector.load %arg6[%c0_12, %c0_13] : memref<128x128xbf16, #tpu.memory_space<vmem>>, vector<128x128xbf16>
    %cst_14 = arith.constant dense<0.000000e+00> : vector<16x128xf32>
    %19 = tpu.matmul %17, %18, %cst_14 {dimension_numbers = #tpu.dot_dimension_numbers<[1], [0], [0], [1], [0, 0, 1, 1], [], []>} : vector<16x128xbf16>, vector<128x128xbf16>, vector<16x128xf32> -> vector<16x128xf32>
    %c0_15 = arith.constant 0 : index
    %c0_16 = arith.constant 0 : index
    %20 = vector.load %arg7[%c0_15, %c0_16] : memref<1x128xf32, #tpu.memory_space<vmem>>, vector<1x128xf32>
    %21 = vector.broadcast %20 : vector<1x128xf32> to vector<16x128xf32>
    %22 = arith.addf %19, %21 : vector<16x128xf32>
    %cst_17 = arith.constant 0.000000e+00 : f32
    %23 = vector.broadcast %cst_17 : f32 to vector<16x128xf32>
    %24 = arith.maximumf %22, %23 : vector<16x128xf32>
    %25 = arith.truncf %24 : vector<16x128xf32> to vector<16x128xbf16>
    %c0_18 = arith.constant 0 : index
    %c0_19 = arith.constant 0 : index
    %26 = vector.load %arg8[%c0_18, %c0_19] : memref<128x4xbf16, #tpu.memory_space<vmem>>, vector<128x4xbf16>
    %cst_20 = arith.constant dense<0.000000e+00> : vector<16x4xf32>
    %27 = tpu.matmul %25, %26, %cst_20 {dimension_numbers = #tpu.dot_dimension_numbers<[1], [0], [0], [1], [0, 0, 1, 1], [], []>} : vector<16x128xbf16>, vector<128x4xbf16>, vector<16x4xf32> -> vector<16x4xf32>
    %c0_21 = arith.constant 0 : index
    %c0_22 = arith.constant 0 : index
    %28 = vector.load %arg9[%c0_21, %c0_22] : memref<1x4xf32, #tpu.memory_space<vmem>>, vector<1x4xf32>
    %29 = vector.broadcast %28 : vector<1x4xf32> to vector<16x4xf32>
    %30 = arith.addf %27, %29 : vector<16x4xf32>
    %c0_23 = arith.constant 0 : index
    %c0_24 = arith.constant 0 : index
    %31 = vector.load %arg10[%c0_23, %c0_24] : memref<16x4xf32, #tpu.memory_space<vmem>>, vector<16x4xf32>
    tpu.vector_store %arg10[%c0_23, %c0_24], %30 {strides = array<i32>} : memref<16x4xf32, #tpu.memory_space<vmem>>, vector<16x4xf32>,
    return
  }
  func.func @transform_0(%arg0: i32) -> (i32, i32) {
    %c0_i32 = arith.constant 0 : i32
    %c0_i32_0 = arith.constant 0 : i32
    return %arg0, %c0_i32 : i32, i32
  }
  func.func @transform_1(%arg0: i32) -> (i32, i32) {
    %c0_i32 = arith.constant 0 : i32
    %c0_i32_0 = arith.constant 0 : i32
    %c0_i32_1 = arith.constant 0 : i32
    return %c0_i32, %c0_i32_0 : i32, i32
  }
  func.func @transform_2(%arg0: i32) -> (i32, i32) {
    %c0_i32 = arith.constant 0 : i32
    %c0_i32_0 = arith.constant 0 : i32
    %c0_i32_1 = arith.constant 0 : i32
    return %c0_i32, %c0_i32_0 : i32, i32
  }
  func.func @transform_3(%arg0: i32) -> (i32, i32) {
    %c0_i32 = arith.constant 0 : i32
    %c0_i32_0 = arith.constant 0 : i32
    %c0_i32_1 = arith.constant 0 : i32
    return %c0_i32, %c0_i32_0 : i32, i32
  }
  func.func @transform_4(%arg0: i32) -> (i32, i32) {
    %c0_i32 = arith.constant 0 : i32
    %c0_i32_0 = arith.constant 0 : i32
    %c0_i32_1 = arith.constant 0 : i32
    return %c0_i32, %c0_i32_0 : i32, i32
  }
  func.func @transform_5(%arg0: i32) -> (i32, i32) {
    %c0_i32 = arith.constant 0 : i32
    %c0_i32_0 = arith.constant 0 : i32
    %c0_i32_1 = arith.constant 0 : i32
    return %c0_i32, %c0_i32_0 : i32, i32
  }
  func.func @transform_6(%arg0: i32) -> (i32, i32) {
    %c0_i32 = arith.constant 0 : i32
    %c0_i32_0 = arith.constant 0 : i32
    %c0_i32_1 = arith.constant 0 : i32
    return %c0_i32, %c0_i32_0 : i32, i32
  }
  func.func @transform_7(%arg0: i32) -> (i32, i32) {
    %c0_i32 = arith.constant 0 : i32
    %c0_i32_0 = arith.constant 0 : i32
    %c0_i32_1 = arith.constant 0 : i32
    return %c0_i32, %c0_i32_0 : i32, i32
  }
  func.func @transform_8(%arg0: i32) -> (i32, i32) {
    %c0_i32 = arith.constant 0 : i32
    %c0_i32_0 = arith.constant 0 : i32
    %c0_i32_1 = arith.constant 0 : i32
    return %c0_i32, %c0_i32_0 : i32, i32
  }
  func.func @transform_9(%arg0: i32) -> (i32, i32) {
    %c0_i32 = arith.constant 0 : i32
    %c0_i32_0 = arith.constant 0 : i32
    return %arg0, %c0_i32 : i32, i32
  }
}

</mosaic_0001>

<bundles_post_ra>
// kernel: tpu_custom_call.1
= control target key start
LH: loop header
LB: loop body
LE: loop exit
PB: predicated region body
PF: predicated region fallthrough
CT: control target
= control target key end

     0   :  { %14 = vsyncpa [#allocation3], 0  ;;  %s881_s0 = inlined_call_operand.hbm [shape: f32[16,16], index: 0, kind: input, shape index: {}]   ;;  %s882_s1 = inlined_call_operand.hbm [shape: bf16[16,128], index: 1, kind: input, shape index: {}]   ;;  %s883_s2 = inlined_call_operand.vmem [shape: f32[1,128], index: 2, kind: input, shape index: {}]   ;;  %s884_s3 = inlined_call_operand.vmem [shape: bf16[128,128], index: 3, kind: input, shape index: {}]   ;;  %s885_s4 = inlined_call_operand.vmem [shape: f32[1,128], index: 4, kind: input, shape index: {}]   ;;  %s886_s5 = inlined_call_operand.hbm [shape: bf16[128,128], index: 5, kind: input, shape index: {}]   ;;  %s887_s6 = inlined_call_operand.vmem [shape: f32[1,128], index: 6, kind: input, shape index: {}]   ;;  %s888_s7 = inlined_call_operand.vmem [shape: bf16[128,4], index: 7, kind: input, shape index: {}]   ;;  %s889_s8 = inlined_call_operand.vmem [shape: f32[1,4], index: 8, kind: input, shape index: {}]   ;;  %s890_s9 = inlined_call_operand.vmem [shape: f32[16,4], index: 9, kind: output, shape index: {}]  }
   0x1   :  { %15 = vsyncpa [#allocation5], 0  ;;  %s714_s30 = smov [#allocation4]  }
   0x2   :  { %s33_s10 = sshll.u32 %s714_s30, 4  ;;  %s34_s10 = int_to_ptr.vmem [resolvable:$true] %s33_s10 }
   0x3   :  { %s658_s11 = scalar_lea.vmem %s34_s10, 128  ;;  %p663_p1 = scmp.lt.s32.totalorder %s34_s10, %s34_s10 }
   0x4   :  { %p659_p0 = scmp.ne.s32.totalorder %s34_s10, %s658_s11  ;;  %p664_p2 = scmp.lt.s32.totalorder %s658_s11, %s658_s11 }
   0x6   :  { %p665_p3 = por %p664_p2, %p663_p1 }
   0x8   :  { %p666_p4 = pnand %p665_p3, %p659_p0 }
   0xa   :  { %669 = shalt.err (!%p666_p4)
}
   0xb   :  { %s715_s12 = smov 64   ;;  %s716_s13 = smov 4  }
   0xc   :  { %39 = dma.hbm_to_vmem [thread:$0]  %s882_s1, 128, %s34_s10, [#allocation5], %s715_s12, %s715_s12, %s716_s13  }
   0xd   :  { %s717_s16 = smov [#allocation2]  }
   0xe   :  { %s21_s17 = sshll.u32 %s717_s16, 4  ;;  %s22_s17 = int_to_ptr.vmem [resolvable:$true] %s21_s17 }
   0xf   :  { %s678_s18 = scalar_lea.vmem %s22_s17, 256  ;;  %p683_p6 = scmp.lt.s32.totalorder %s22_s17, %s22_s17 }
  0x10   :  { %p679_p5 = scmp.ne.s32.totalorder %s22_s17, %s678_s18  ;;  %p684_p7 = scmp.lt.s32.totalorder %s678_s18, %s678_s18 }
  0x12   :  { %p685_p8 = por %p684_p7, %p683_p6 }
  0x14   :  { %p686_p9 = pnand %p685_p8, %p679_p5 }
  0x16   :  { %689 = shalt.err (!%p686_p9)
}
  0x17   :  { %s718_s19 = smov 128   ;;  %s719_s20 = smov 8  }
  0x18   :  { %27 = dma.hbm_to_vmem [thread:$0]  %s881_s0, 256, %s22_s17, [#allocation3], %s718_s19, %s718_s19, %s719_s20  }
  0x19   :  { %s720_s23 = smov [#allocation6]  }
  0x1a   :  { %s51_s24 = sshll.u32 %s720_s23, 4  ;;  %s52_s24 = int_to_ptr.vmem [resolvable:$true] %s51_s24 }
  0x1b   :  { %s698_s1 = scalar_lea.vmem %s52_s24, 1024  ;;  %p703_p11 = scmp.lt.s32.totalorder %s52_s24, %s52_s24 }
  0x1c   :  { %p699_p10 = scmp.ne.s32.totalorder %s52_s24, %s698_s1  ;;  %p704_p12 = scmp.lt.s32.totalorder %s698_s1, %s698_s1 }
  0x1e   :  { %p705_p13 = por %p704_p12, %p703_p11 }
  0x20   :  { %p706_p0 = pnand %p705_p13, %p699_p10 }
  0x22   :  { %709 = shalt.err (!%p706_p0)
}
  0x23   :  { %57 = dma.hbm_to_vmem [thread:$0]  %s886_s5, 1024, %s52_s24, [#allocation5], %s715_s12, %s715_s12, %s716_s13  }
  0x24   :  { %710 = dma.done.wait [#allocation3], 256  }
  0x25   :  { %711 = vsyncadd [#allocation3], 4294967040 }
  0x26   :  { %712 = dma.done.wait [#allocation5], 1152  }
  0x27   :  { %713 = vsyncadd [#allocation5], 4294966144  ;;  %v721_v0 = vmov 0.0   ;;  %vm722_vm0 = vmmov 0   ;;  %v625_v1 = vld [vmem:[#allocation4] sm:$0xff]   ;;  %v74_v2 = vld [vmem:[#allocation2] sm:$0xff] }
  0x28   :  { %550 = vmatprep.subr.bf16.mxu0 %v721_v0  ;;  %552 = vmatprep.mubr.msk.bf16.mxu0 %vm722_vm0, %v721_v0  ;;  %v75_v3 = vld [vmem:[#allocation2 + $0x8] sm:$0xff]  ;;  %vm92_vm1 = vcmask 130048   ;;  %v626_v5 = vld [vmem:[%s884_s3 + $0x38] sm:$0xff]   ;;  %v627_v6 = vld [vmem:[%s884_s3 + $0x30] sm:$0xff]   ;;  %vm482_vm2 = vcmask 31744  }
  0x29   :  { %556 = vmatprep.subr.bf16.mxu1 %v721_v0  ;;  %572 = vmatprep.mubr.msk.bf16.mxu1 %vm722_vm0, %v721_v0  ;;  %v76_v4 = vpack.c.bf16 %v75_v3, %v74_v2  ;;  %v628_v7 = vld [vmem:[%s884_s3 + $0x28] sm:$0xff]   ;;  %v629_v8 = vld [vmem:[%s884_s3 + $0x20] sm:$0xff]   ;;  %v630_v9 = vld [vmem:[%s884_s3 + $0x18] sm:$0xff]  }
  0x2a   :  { %551 = vmatpush3.bf16.msra.mxu0 %v625_v1  ;;  %557 = vmatpush3.bf16.msra.mxu1 %v626_v5  ;;  %v631_v10 = vld [vmem:[%s884_s3 + $0x10] sm:$0xff]   ;;  %v632_v11 = vld [vmem:[%s884_s3 + $0x8] sm:$0xff]   ;;  %v633_v12 = vld [vmem:[%s884_s3] sm:$0xff]  }
  0x2b   :  { %576 = vmatprep.subr.bf16.mxu0 %v721_v0  ;;  %558 = vmatprep.subr.bf16.mxu1 %v721_v0  ;;  %v634_v13 = vld [vmem:[#allocation6 + $0x38] sm:$0xff]   ;;  %v635_v14 = vld [vmem:[#allocation6 + $0x30] sm:$0xff]   ;;  %v636_v15 = vld [vmem:[#allocation6 + $0x28] sm:$0xff]  }
  0x2c   :  { %v637_v16 = vld [vmem:[#allocation6 + $0x20] sm:$0xff]   ;;  %v638_v17 = vld [vmem:[#allocation6 + $0x18] sm:$0xff]   ;;  %v491_v18 = vld [vmem:[%s883_s2] ss:$0 sm:$0xff] }
  0x2d   :  { %553 = vmatmul.mubr.msk.bf16.vlgmr.msra.gmra.mxu0 %vm92_vm1, %v76_v4  ;;  %v639_v28 = vld [vmem:[#allocation6 + $0x10] sm:$0xff]   ;;  %v640_v29 = vld [vmem:[#allocation6 + $0x8] sm:$0xff]   ;;  %v641_v30 = vld [vmem:[#allocation6] sm:$0xff]  }
  0x2e   :  { %592 = vmatprep.mubr.msk.bf16.mxu0 %vm722_vm0, %v721_v0  ;;  %559 = vmatpush3.bf16.msra.mxu1 %v627_v6  ;;  %v642_v31 = vld [vmem:[%s888_s7 + $0x38] sm:$0xff]   ;;  %v643_v32 = vld [vmem:[%s888_s7 + $0x30] sm:$0xff]   ;;  %v644_v33 = vld [vmem:[%s888_s7 + $0x28] sm:$0xff]  }
  0x2f   :  { %560 = vmatprep.subr.bf16.mxu1 %v721_v0  ;;  %577 = vmatpush3.bf16.msra.mxu0 %v634_v13  ;;  %v645_v34 = vld [vmem:[%s888_s7 + $0x20] sm:$0xff]   ;;  %v646_v35 = vld [vmem:[%s888_s7 + $0x18] sm:$0xff]   ;;  %v647_v46 = vld [vmem:[%s888_s7 + $0x10] sm:$0xff]  }
  0x30   :  { %578 = vmatprep.subr.bf16.mxu0 %v721_v0  ;;  %v494_v36 = vld [vmem:[%s885_s4] ss:$0 sm:$0xff]  ;;  %v648_v47 = vld [vmem:[%s888_s7 + $0x8] sm:$0xff]  }
  0x31   :  { %v649_v48 = vld [vmem:[%s888_s7] sm:$0xff]  }
  0x32   :  { %561 = vmatpush3.bf16.msra.mxu1 %v628_v7  ;;  %v503_v49 = vld [vmem:[%s887_s6] ss:$0 sm:$0xff] }
  0x33   :  { %562 = vmatprep.subr.bf16.mxu1 %v721_v0  ;;  %579 = vmatpush3.bf16.msra.mxu0 %v635_v14  ;;  %v512_v59 = vld [vmem:[%s889_s8] ss:$0 sm:$0xff] }
  0x34   :  { %580 = vmatprep.subr.bf16.mxu0 %v721_v0 }
  0x36   :  { %563 = vmatpush3.bf16.msra.mxu1 %v629_v8 }
  0x37   :  { %564 = vmatprep.subr.bf16.mxu1 %v721_v0  ;;  %581 = vmatpush3.bf16.msra.mxu0 %v636_v15 }
  0x38   :  { %582 = vmatprep.subr.bf16.mxu0 %v721_v0 }
  0x3a   :  { %565 = vmatpush3.bf16.msra.mxu1 %v630_v9 }
  0x3b   :  { %566 = vmatprep.subr.bf16.mxu1 %v721_v0  ;;  %583 = vmatpush3.bf16.msra.mxu0 %v637_v16 }
  0x3c   :  { %584 = vmatprep.subr.bf16.mxu0 %v721_v0 }
  0x3e   :  { %567 = vmatpush3.bf16.msra.mxu1 %v631_v10 }
  0x3f   :  { %568 = vmatprep.subr.bf16.mxu1 %v721_v0  ;;  %585 = vmatpush3.bf16.msra.mxu0 %v638_v17 }
  0x40   :  { %586 = vmatprep.subr.bf16.mxu0 %v721_v0 }
  0x42   :  { %569 = vmatpush3.bf16.msra.mxu1 %v632_v11 }
  0x43   :  { %570 = vmatprep.subr.bf16.mxu1 %v721_v0  ;;  %587 = vmatpush3.bf16.msra.mxu0 %v639_v28 }
  0x44   :  { %588 = vmatprep.subr.bf16.mxu0 %v721_v0 }
  0x46   :  { %571 = vmatpush3.bf16.msra.mxu1 %v633_v12 }
  0x47   :  { %596 = vmatprep.subr.bf16.mxu1 %v721_v0  ;;  %589 = vmatpush3.bf16.msra.mxu0 %v640_v29 }
  0x48   :  { %590 = vmatprep.subr.bf16.mxu0 %v721_v0 }
  0x4b   :  { %591 = vmatpush3.bf16.msra.mxu0 %v641_v30 }
  0xed   :  { %v130_v19 = vpop.f32.mrf.mxu0 }
  0xee   :  { %v131_v21 = vadd.f32 %v491_v18, %v130_v19 }
  0xef   :  { %v554_v20 = vpop.f32.mrf.mxu0 }
  0xf0   :  { %v137_v25 = vmax.f32 %v131_v21, 0.0 }
  0xf1   :  { %v133_v22 = vpop.f32.mrf.mxu0 }
  0xf2   :  { %v134_v23 = vadd.f32 %v491_v18, %v133_v22 }
  0xf3   :  { %v555_v24 = vpop.f32.mrf.mxu0 }
  0xf4   :  { %v138_v26 = vmax.f32 %v134_v23, 0.0 }
  0xf6   :  { %v139_v27 = vpack.c.bf16 %v138_v26, %v137_v25 }
  0xf8   :  { %573 = vmatmul.mubr.bf16.vlgmr.msra.gmra.mxu1 %v139_v27 }
  0xf9   :  { %612 = vmatprep.mubr.msk.bf16.mxu1 %vm722_vm0, %v721_v0  ;;  %597 = vmatpush3.bf16.msra.mxu1 %v642_v31 }
  0xfa   :  { %598 = vmatprep.subr.bf16.mxu1 %v721_v0 }
  0xfd   :  { %599 = vmatpush3.bf16.msra.mxu1 %v643_v32 }
  0xfe   :  { %600 = vmatprep.subr.bf16.mxu1 %v721_v0 }
 0x101   :  { %601 = vmatpush3.bf16.msra.mxu1 %v644_v33 }
 0x102   :  { %602 = vmatprep.subr.bf16.mxu1 %v721_v0 }
 0x105   :  { %603 = vmatpush3.bf16.msra.mxu1 %v645_v34 }
 0x106   :  { %604 = vmatprep.subr.bf16.mxu1 %v721_v0 }
 0x109   :  { %605 = vmatpush3.bf16.msra.mxu1 %v646_v35 }
 0x10a   :  { %606 = vmatprep.subr.bf16.mxu1 %v721_v0 }
 0x10d   :  { %607 = vmatpush3.bf16.msra.mxu1 %v647_v46 }
 0x10e   :  { %608 = vmatprep.subr.bf16.mxu1 %v721_v0 }
 0x111   :  { %609 = vmatpush3.bf16.msra.mxu1 %v648_v47 }
 0x112   :  { %610 = vmatprep.subr.bf16.mxu1 %v721_v0 }
 0x115   :  { %611 = vmatpush3.bf16.msra.mxu1 %v649_v48 }
 0x1b8   :  { %v245_v37 = vpop.f32.mrf.mxu1 }
 0x1b9   :  { %v246_v39 = vadd.f32 %v494_v36, %v245_v37 }
 0x1ba   :  { %v574_v38 = vpop.f32.mrf.mxu1 }
 0x1bb   :  { %v252_v43 = vmax.f32 %v246_v39, 0.0 }
 0x1bc   :  { %v248_v40 = vpop.f32.mrf.mxu1 }
 0x1bd   :  { %v249_v41 = vadd.f32 %v494_v36, %v248_v40 }
 0x1be   :  { %v575_v42 = vpop.f32.mrf.mxu1 }
 0x1bf   :  { %v253_v44 = vmax.f32 %v249_v41, 0.0 }
 0x1c1   :  { %v254_v45 = vpack.c.bf16 %v253_v44, %v252_v43 }
 0x1c3   :  { %593 = vmatmul.mubr.bf16.vlgmr.msra.gmra.mxu0 %v254_v45 }
 0x283   :  { %v360_v50 = vpop.f32.mrf.mxu0 }
 0x284   :  { %v361_v52 = vadd.f32 %v503_v49, %v360_v50 }
 0x285   :  { %v594_v51 = vpop.f32.mrf.mxu0 }
 0x286   :  { %v367_v56 = vmax.f32 %v361_v52, 0.0 }
 0x287   :  { %v363_v53 = vpop.f32.mrf.mxu0 }
 0x288   :  { %v364_v54 = vadd.f32 %v503_v49, %v363_v53 }
 0x289   :  { %v595_v55 = vpop.f32.mrf.mxu0 }
 0x28a   :  { %v368_v57 = vmax.f32 %v364_v54, 0.0 }
 0x28c   :  { %v369_v58 = vpack.c.bf16 %v368_v57, %v367_v56 }
 0x28e   :  { %613 = vmatmul.mubr.bf16.vlgmr.msra.gmra.mxu1 %v369_v58 }
 0x34e   :  { %v475_v60 = vpop.f32.mrf.mxu1 }
 0x34f   :  { %v476_v61 = vadd.f32 %v512_v59, %v475_v60 }
 0x350   :  { %v614_v62 = vpop.f32.mrf.mxu1 }
 0x351   :  { %483 = vst.msk [vmem:[%s890_s9] sm:$0xff] %vm482_vm2, %v476_v61 }
 0x352   :  { %v478_v63 = vpop.f32.mrf.mxu1 }
 0x353   :  { %v479_v0 = vadd.f32 %v512_v59, %v478_v63 }
 0x354   :  { %v615_v1 = vpop.f32.mrf.mxu1 }
 0x355   :  { %484 = vst.msk [vmem:[%s890_s9 + $0x8] sm:$0xff] %vm482_vm2, %v479_v0 }
 0x356   :  { %489 = vsyncpa [#allocation3], 1 }
 0x357   :  { %490 = vsyncpa [#allocation5], 1 }

// kernel: tpu_custom_call.1
= control target key start
LH: loop header
LB: loop body
LE: loop exit
PB: predicated region body
PF: predicated region fallthrough
CT: control target
= control target key end

     0   :  { %14 = vsyncpa [#allocation3], 0  ;;  %s881_s0 = inlined_call_operand.hbm [shape: f32[16,16], index: 0, kind: input, shape index: {}]   ;;  %s882_s1 = inlined_call_operand.hbm [shape: bf16[16,128], index: 1, kind: input, shape index: {}]   ;;  %s883_s2 = inlined_call_operand.vmem [shape: f32[1,128], index: 2, kind: input, shape index: {}]   ;;  %s884_s3 = inlined_call_operand.vmem [shape: bf16[128,128], index: 3, kind: input, shape index: {}]   ;;  %s885_s4 = inlined_call_operand.vmem [shape: f32[1,128], index: 4, kind: input, shape index: {}]   ;;  %s886_s5 = inlined_call_operand.hbm [shape: bf16[128,128], index: 5, kind: input, shape index: {}]   ;;  %s887_s6 = inlined_call_operand.vmem [shape: f32[1,128], index: 6, kind: input, shape index: {}]   ;;  %s888_s7 = inlined_call_operand.vmem [shape: bf16[128,4], index: 7, kind: input, shape index: {}]   ;;  %s889_s8 = inlined_call_operand.vmem [shape: f32[1,4], index: 8, kind: input, shape index: {}]   ;;  %s890_s9 = inlined_call_operand.vmem [shape: f32[16,4], index: 9, kind: output, shape index: {}]  }
   0x1   :  { %15 = vsyncpa [#allocation5], 0  ;;  %s714_s30 = smov [#allocation4]  }
   0x2   :  { %s33_s10 = sshll.u32 %s714_s30, 4  ;;  %s34_s10 = int_to_ptr.vmem [resolvable:$true] %s33_s10 }
   0x3   :  { %s658_s11 = scalar_lea.vmem %s34_s10, 128  ;;  %p663_p1 = scmp.lt.s32.totalorder %s34_s10, %s34_s10 }
   0x4   :  { %p659_p0 = scmp.ne.s32.totalorder %s34_s10, %s658_s11  ;;  %p664_p2 = scmp.lt.s32.totalorder %s658_s11, %s658_s11 }
   0x6   :  { %p665_p3 = por %p664_p2, %p663_p1 }
   0x8   :  { %p666_p4 = pnand %p665_p3, %p659_p0 }
   0xa   :  { %669 = shalt.err (!%p666_p4)
}
   0xb   :  { %s715_s12 = smov 64   ;;  %s716_s13 = smov 4  }
   0xc   :  { %39 = dma.hbm_to_vmem [thread:$0]  %s882_s1, 128, %s34_s10, [#allocation5], %s715_s12, %s715_s12, %s716_s13  }
   0xd   :  { %s717_s16 = smov [#allocation2]  }
   0xe   :  { %s21_s17 = sshll.u32 %s717_s16, 4  ;;  %s22_s17 = int_to_ptr.vmem [resolvable:$true] %s21_s17 }
   0xf   :  { %s678_s18 = scalar_lea.vmem %s22_s17, 256  ;;  %p683_p6 = scmp.lt.s32.totalorder %s22_s17, %s22_s17 }
  0x10   :  { %p679_p5 = scmp.ne.s32.totalorder %s22_s17, %s678_s18  ;;  %p684_p7 = scmp.lt.s32.totalorder %s678_s18, %s678_s18 }
  0x12   :  { %p685_p8 = por %p684_p7, %p683_p6 }
  0x14   :  { %p686_p9 = pnand %p685_p8, %p679_p5 }
  0x16   :  { %689 = shalt.err (!%p686_p9)
}
  0x17   :  { %s718_s19 = smov 128   ;;  %s719_s20 = smov 8  }
  0x18   :  { %27 = dma.hbm_to_vmem [thread:$0]  %s881_s0, 256, %s22_s17, [#allocation3], %s718_s19, %s718_s19, %s719_s20  }
  0x19   :  { %s720_s23 = smov [#allocation6]  }
  0x1a   :  { %s51_s24 = sshll.u32 %s720_s23, 4  ;;  %s52_s24 = int_to_ptr.vmem [resolvable:$true] %s51_s24 }
  0x1b   :  { %s698_s1 = scalar_lea.vmem %s52_s24, 1024  ;;  %p703_p11 = scmp.lt.s32.totalorder %s52_s24, %s52_s24 }
  0x1c   :  { %p699_p10 = scmp.ne.s32.totalorder %s52_s24, %s698_s1  ;;  %p704_p12 = scmp.lt.s32.totalorder %s698_s1, %s698_s1 }
  0x1e   :  { %p705_p13 = por %p704_p12, %p703_p11 }
  0x20   :  { %p706_p0 = pnand %p705_p13, %p699_p10 }
  0x22   :  { %709 = shalt.err (!%p706_p0)
}
  0x23   :  { %57 = dma.hbm_to_vmem [thread:$0]  %s886_s5, 1024, %s52_s24, [#allocation5], %s715_s12, %s715_s12, %s716_s13  }
  0x24   :  { %710 = dma.done.wait [#allocation3], 256  }
  0x25   :  { %711 = vsyncadd [#allocation3], 4294967040 }
  0x26   :  { %712 = dma.done.wait [#allocation5], 1152  }
  0x27   :  { %713 = vsyncadd [#allocation5], 4294966144  ;;  %v721_v0 = vmov 0.0   ;;  %vm722_vm0 = vmmov 0   ;;  %v625_v1 = vld [vmem:[#allocation4] sm:$0xff]   ;;  %v74_v2 = vld [vmem:[#allocation2] sm:$0xff] }
  0x28   :  { %550 = vmatprep.subr.bf16.mxu0 %v721_v0  ;;  %552 = vmatprep.mubr.msk.bf16.mxu0 %vm722_vm0, %v721_v0  ;;  %v75_v3 = vld [vmem:[#allocation2 + $0x8] sm:$0xff]  ;;  %vm92_vm1 = vcmask 130048   ;;  %v626_v5 = vld [vmem:[%s884_s3 + $0x38] sm:$0xff]   ;;  %v627_v6 = vld [vmem:[%s884_s3 + $0x30] sm:$0xff]   ;;  %vm482_vm2 = vcmask 31744  }
  0x29   :  { %556 = vmatprep.subr.bf16.mxu1 %v721_v0  ;;  %572 = vmatprep.mubr.msk.bf16.mxu1 %vm722_vm0, %v721_v0  ;;  %v76_v4 = vpack.c.bf16 %v75_v3, %v74_v2  ;;  %v628_v7 = vld [vmem:[%s884_s3 + $0x28] sm:$0xff]   ;;  %v629_v8 = vld [vmem:[%s884_s3 + $0x20] sm:$0xff]   ;;  %v630_v9 = vld [vmem:[%s884_s3 + $0x18] sm:$0xff]  }
  0x2a   :  { %551 = vmatpush3.bf16.msra.mxu0 %v625_v1  ;;  %557 = vmatpush3.bf16.msra.mxu1 %v626_v5  ;;  %v631_v10 = vld [vmem:[%s884_s3 + $0x10] sm:$0xff]   ;;  %v632_v11 = vld [vmem:[%s884_s3 + $0x8] sm:$0xff]   ;;  %v633_v12 = vld [vmem:[%s884_s3] sm:$0xff]  }
  0x2b   :  { %576 = vmatprep.subr.bf16.mxu0 %v721_v0  ;;  %558 = vmatprep.subr.bf16.mxu1 %v721_v0  ;;  %v634_v13 = vld [vmem:[#allocation6 + $0x38] sm:$0xff]   ;;  %v635_v14 = vld [vmem:[#allocation6 + $0x30] sm:$0xff]   ;;  %v636_v15 = vld [vmem:[#allocation6 + $0x28] sm:$0xff]  }
  0x2c   :  { %v637_v16 = vld [vmem:[#allocation6 + $0x20] sm:$0xff]   ;;  %v638_v17 = vld [vmem:[#allocation6 + $0x18] sm:$0xff]   ;;  %v491_v18 = vld [vmem:[%s883_s2] ss:$0 sm:$0xff] }
  0x2d   :  { %553 = vmatmul.mubr.msk.bf16.vlgmr.msra.gmra.mxu0 %vm92_vm1, %v76_v4  ;;  %v639_v28 = vld [vmem:[#allocation6 + $0x10] sm:$0xff]   ;;  %v640_v29 = vld [vmem:[#allocation6 + $0x8] sm:$0xff]   ;;  %v641_v30 = vld [vmem:[#allocation6] sm:$0xff]  }
  0x2e   :  { %592 = vmatprep.mubr.msk.bf16.mxu0 %vm722_vm0, %v721_v0  ;;  %559 = vmatpush3.bf16.msra.mxu1 %v627_v6  ;;  %v642_v31 = vld [vmem:[%s888_s7 + $0x38] sm:$0xff]   ;;  %v643_v32 = vld [vmem:[%s888_s7 + $0x30] sm:$0xff]   ;;  %v644_v33 = vld [vmem:[%s888_s7 + $0x28] sm:$0xff]  }
  0x2f   :  { %560 = vmatprep.subr.bf16.mxu1 %v721_v0  ;;  %577 = vmatpush3.bf16.msra.mxu0 %v634_v13  ;;  %v645_v34 = vld [vmem:[%s888_s7 + $0x20] sm:$0xff]   ;;  %v646_v35 = vld [vmem:[%s888_s7 + $0x18] sm:$0xff]   ;;  %v647_v46 = vld [vmem:[%s888_s7 + $0x10] sm:$0xff]  }
  0x30   :  { %578 = vmatprep.subr.bf16.mxu0 %v721_v0  ;;  %v494_v36 = vld [vmem:[%s885_s4] ss:$0 sm:$0xff]  ;;  %v648_v47 = vld [vmem:[%s888_s7 + $0x8] sm:$0xff]  }
  0x31   :  { %v649_v48 = vld [vmem:[%s888_s7] sm:$0xff]  }
  0x32   :  { %561 = vmatpush3.bf16.msra.mxu1 %v628_v7  ;;  %v503_v49 = vld [vmem:[%s887_s6] ss:$0 sm:$0xff] }
  0x33   :  { %562 = vmatprep.subr.bf16.mxu1 %v721_v0  ;;  %579 = vmatpush3.bf16.msra.mxu0 %v635_v14  ;;  %v512_v59 = vld [vmem:[%s889_s8] ss:$0 sm:$0xff] }
  0x34   :  { %580 = vmatprep.subr.bf16.mxu0 %v721_v0 }
  0x36   :  { %563 = vmatpush3.bf16.msra.mxu1 %v629_v8 }
  0x37   :  { %564 = vmatprep.subr.bf16.mxu1 %v721_v0  ;;  %581 = vmatpush3.bf16.msra.mxu0 %v636_v15 }
  0x38   :  { %582 = vmatprep.subr.bf16.mxu0 %v721_v0 }
  0x3a   :  { %565 = vmatpush3.bf16.msra.mxu1 %v630_v9 }
  0x3b   :  { %566 = vmatprep.subr.bf16.mxu1 %v721_v0  ;;  %583 = vmatpush3.bf16.msra.mxu0 %v637_v16 }
  0x3c   :  { %584 = vmatprep.subr.bf16.mxu0 %v721_v0 }
  0x3e   :  { %567 = vmatpush3.bf16.msra.mxu1 %v631_v10 }
  0x3f   :  { %568 = vmatprep.subr.bf16.mxu1 %v721_v0  ;;  %585 = vmatpush3.bf16.msra.mxu0 %v638_v17 }
  0x40   :  { %586 = vmatprep.subr.bf16.mxu0 %v721_v0 }
  0x42   :  { %569 = vmatpush3.bf16.msra.mxu1 %v632_v11 }
  0x43   :  { %570 = vmatprep.subr.bf16.mxu1 %v721_v0  ;;  %587 = vmatpush3.bf16.msra.mxu0 %v639_v28 }
  0x44   :  { %588 = vmatprep.subr.bf16.mxu0 %v721_v0 }
  0x46   :  { %571 = vmatpush3.bf16.msra.mxu1 %v633_v12 }
  0x47   :  { %596 = vmatprep.subr.bf16.mxu1 %v721_v0  ;;  %589 = vmatpush3.bf16.msra.mxu0 %v640_v29 }
  0x48   :  { %590 = vmatprep.subr.bf16.mxu0 %v721_v0 }
  0x4b   :  { %591 = vmatpush3.bf16.msra.mxu0 %v641_v30 }
  0xed   :  { %v130_v19 = vpop.f32.mrf.mxu0 }
  0xee   :  { %v131_v21 = vadd.f32 %v491_v18, %v130_v19 }
  0xef   :  { %v554_v20 = vpop.f32.mrf.mxu0 }
  0xf0   :  { %v137_v25 = vmax.f32 %v131_v21, 0.0 }
  0xf1   :  { %v133_v22 = vpop.f32.mrf.mxu0 }
  0xf2   :  { %v134_v23 = vadd.f32 %v491_v18, %v133_v22 }
  0xf3   :  { %v555_v24 = vpop.f32.mrf.mxu0 }
  0xf4   :  { %v138_v26 = vmax.f32 %v134_v23, 0.0 }
  0xf6   :  { %v139_v27 = vpack.c.bf16 %v138_v26, %v137_v25 }
  0xf8   :  { %573 = vmatmul.mubr.bf16.vlgmr.msra.gmra.mxu1 %v139_v27 }
  0xf9   :  { %612 = vmatprep.mubr.msk.bf16.mxu1 %vm722_vm0, %v721_v0  ;;  %597 = vmatpush3.bf16.msra.mxu1 %v642_v31 }
  0xfa   :  { %598 = vmatprep.subr.bf16.mxu1 %v721_v0 }
  0xfd   :  { %599 = vmatpush3.bf16.msra.mxu1 %v643_v32 }
  0xfe   :  { %600 = vmatprep.subr.bf16.mxu1 %v721_v0 }
 0x101   :  { %601 = vmatpush3.bf16.msra.mxu1 %v644_v33 }
 0x102   :  { %602 = vmatprep.subr.bf16.mxu1 %v721_v0 }
 0x105   :  { %603 = vmatpush3.bf16.msra.mxu1 %v645_v34 }
 0x106   :  { %604 = vmatprep.subr.bf16.mxu1 %v721_v0 }
 0x109   :  { %605 = vmatpush3.bf16.msra.mxu1 %v646_v35 }
 0x10a   :  { %606 = vmatprep.subr.bf16.mxu1 %v721_v0 }
 0x10d   :  { %607 = vmatpush3.bf16.msra.mxu1 %v647_v46 }
 0x10e   :  { %608 = vmatprep.subr.bf16.mxu1 %v721_v0 }
 0x111   :  { %609 = vmatpush3.bf16.msra.mxu1 %v648_v47 }
 0x112   :  { %610 = vmatprep.subr.bf16.mxu1 %v721_v0 }
 0x115   :  { %611 = vmatpush3.bf16.msra.mxu1 %v649_v48 }
 0x1b8   :  { %v245_v37 = vpop.f32.mrf.mxu1 }
 0x1b9   :  { %v246_v39 = vadd.f32 %v494_v36, %v245_v37 }
 0x1ba   :  { %v574_v38 = vpop.f32.mrf.mxu1 }
 0x1bb   :  { %v252_v43 = vmax.f32 %v246_v39, 0.0 }
 0x1bc   :  { %v248_v40 = vpop.f32.mrf.mxu1 }
 0x1bd   :  { %v249_v41 = vadd.f32 %v494_v36, %v248_v40 }
 0x1be   :  { %v575_v42 = vpop.f32.mrf.mxu1 }
 0x1bf   :  { %v253_v44 = vmax.f32 %v249_v41, 0.0 }
 0x1c1   :  { %v254_v45 = vpack.c.bf16 %v253_v44, %v252_v43 }
 0x1c3   :  { %593 = vmatmul.mubr.bf16.vlgmr.msra.gmra.mxu0 %v254_v45 }
 0x283   :  { %v360_v50 = vpop.f32.mrf.mxu0 }
 0x284   :  { %v361_v52 = vadd.f32 %v503_v49, %v360_v50 }
 0x285   :  { %v594_v51 = vpop.f32.mrf.mxu0 }
 0x286   :  { %v367_v56 = vmax.f32 %v361_v52, 0.0 }
 0x287   :  { %v363_v53 = vpop.f32.mrf.mxu0 }
 0x288   :  { %v364_v54 = vadd.f32 %v503_v49, %v363_v53 }
 0x289   :  { %v595_v55 = vpop.f32.mrf.mxu0 }
 0x28a   :  { %v368_v57 = vmax.f32 %v364_v54, 0.0 }
 0x28c   :  { %v369_v58 = vpack.c.bf16 %v368_v57, %v367_v56 }
 0x28e   :  { %613 = vmatmul.mubr.bf16.vlgmr.msra.gmra.mxu1 %v369_v58 }
 0x34e   :  { %v475_v60 = vpop.f32.mrf.mxu1 }
 0x34f   :  { %v476_v61 = vadd.f32 %v512_v59, %v475_v60 }
 0x350   :  { %v614_v62 = vpop.f32.mrf.mxu1 }
 0x351   :  { %483 = vst.msk [vmem:[%s890_s9] sm:$0xff] %vm482_vm2, %v476_v61 }
 0x352   :  { %v478_v63 = vpop.f32.mrf.mxu1 }
 0x353   :  { %v479_v0 = vadd.f32 %v512_v59, %v478_v63 }
 0x354   :  { %v615_v1 = vpop.f32.mrf.mxu1 }
 0x355   :  { %484 = vst.msk [vmem:[%s890_s9 + $0x8] sm:$0xff] %vm482_vm2, %v479_v0 }
 0x356   :  { %489 = vsyncpa [#allocation3], 1 }
 0x357   :  { %490 = vsyncpa [#allocation5], 1 }

</bundles_post_ra>
